<compile_context>
chip_gen: v5e
topology: v5e:2x2
jax: 0.10.0
libtpu: 0.0.40
codegen_flags: <defaults>
</compile_context>

<pallas_src>
import jax
import jax.numpy as jnp
from jax.experimental import pallas as pl
from jax.experimental.pallas import tpu as pltpu


def _round_up(x: int, m: int) -> int:
    return ((x + m - 1) // m) * m


def _default_tile_config() -> tuple[int, int, int]:
    """Generation-aware (tm, tn, tk) maxima."""
    try:
        kind = jax.devices()[0].device_kind.lower()
    except Exception:  # pragma: no cover - defensive
        kind = ""
    if "v6" in kind:
        # v6e: ~918 TF/s vs ~1.35 TB/s -> need ~680 flop/byte; 1/(1/1024+1/2048)≈683.
        return 1024, 2048, 512
    if "v5 lite" in kind or "v5e" in kind or "v5lite" in kind:
        # v5e: weakest MXU / single vst slot -> fatter K steps (fewer acc RMWs).
        return 512, 1024, 1024
    if "v7" in kind or "tpu7" in kind or "tpu 7" in kind:
        # v7x: 2x HBM BW (lower ridge ~310) but only 64 MiB VMEM per TC.
        return 512, 1024, 512
    return 512, 1024, 512


def _vmem_limit_bytes(tm: int, tn: int, tk: int, r_p: int,
                      in_bytes: int, out_bytes: int) -> int:
    """Double-buffered footprint + headroom, clamped to a v7x-safe range."""
    dbuf = 2
    total = (tm * tk * in_bytes * dbuf            # x tile
             + tk * tn * in_bytes * dbuf          # W^T tile
             + tm * r_p * 4 * dbuf                # xa tile (f32)
             + r_p * tn * 4 * dbuf                # (scaling*lora_b)^T tile (f32)
             + 8 * tn * 4 * dbuf                  # 2*bias tile (padded sublanes)
             + tm * tn * out_bytes * dbuf         # output tile
             + tm * tn * 4)                       # f32 accumulator scratch
    total = int(total * 1.3)
    return min(max(total, 32 * 1024 * 1024), 64 * 1024 * 1024)


def _lora_row_parallel_kernel(x_ref, w_ref, xa_ref, b_ref, bias2_ref, o_ref,
                              acc_ref):
    """One (i, j, k) grid step.

    x_ref:     (tm, tk)   activation tile              (native dtype, e.g. bf16)
    w_ref:     (tk, tn)   W^T tile                     (native dtype)
    xa_ref:    (tm, r_p)  precomputed x @ lora_a^T     (f32)
    b_ref:     (r_p, tn)  (scaling * lora_b)^T tile    (f32)
    bias2_ref: (1, tn)    2 * bias tile                (f32)
    o_ref:     (tm, tn)   output tile                  (native dtype)
    acc_ref:   (tm, tn)   f32 base-GEMM accumulator    (VMEM scratch)
    """
    k = pl.program_id(2)
    nk = pl.num_programs(2)

    @pl.when(k == 0)
    def _init_acc():
        acc_ref[...] = jnp.zeros_like(acc_ref)

    # Base row-parallel GEMM: accumulate x @ W^T over K (MXU, f32 accumulate).
    acc_ref[...] += jnp.dot(x_ref[...], w_ref[...],
                            preferred_element_type=jnp.float32)

    # Epilogue, once per output tile: tiny (tm, r) x (r, tn) LoRA-B dot in f32
    # (scaling pre-folded), doubled-bias add, final cast, lane-dense store.
    @pl.when(k == nk - 1)
    def _epilogue():
        lora = jnp.dot(xa_ref[...], b_ref[...],
                       preferred_element_type=jnp.float32)
        o_ref[...] = (acc_ref[...] + lora + bias2_ref[...]).astype(o_ref.dtype)


def make_lora_row_parallel_linear(weight, lora_a, lora_b, bias, *, scaling,
                                  tm=None, tn=None, tk=None):
    """Build the forward fn of LoraRowParallelLinear (not merged, no dropout,
    single rank), caching the parameter layout (transpose / scale / pad) once.

    weight: (out_features, in_features)
    lora_a: (r, in_features)
    lora_b: (out_features, r)
    bias:   (out_features,)
    Returns: forward(x) with x of shape (..., in_features).
    """
    out_features, in_features = weight.shape
    r = lora_a.shape[0]

    tm_max, tn_max, tk_max = _default_tile_config()
    if tm is not None:
        tm_max = tm
    if tn is not None:
        tn_max = tn
    if tk is not None:
        tk_max = tk

    # Lane-aligned N/K tiles, capped at the (padded) problem dims.
    tn_ = min(tn_max, _round_up(out_features, 128))
    tk_ = min(tk_max, _round_up(in_features, 128))
    r_p = _round_up(r, 8)
    n_p = _round_up(out_features, tn_)
    k_p = _round_up(in_features, tk_)

    # ---- one-time parameter layout (cached across calls) ----
    w_t = jnp.pad(weight.T, ((0, k_p - in_features), (0, n_p - out_features)))
    a_t = lora_a.T                                                 # (K, r), wrapper GEMM
    b_f32 = jnp.pad((lora_b.astype(jnp.float32) * scaling).T,      # (r, N) in f32
                    ((0, r_p - r), (0, n_p - out_features)))
    bias2 = jnp.pad((2.0 * bias.astype(jnp.float32)).reshape(1, -1),
                    ((0, 0), (0, n_p - out_features)))

    in_bytes = jnp.dtype(weight.dtype).itemsize

    def forward(x):
        lead_shape = x.shape[:-1]
        x2d = x.reshape(-1, in_features)
        m = x2d.shape[0]

        out_bytes = jnp.dtype(x.dtype).itemsize
        tm_ = min(tm_max, _round_up(m, 8))      # small M -> single M tile
        m_p = _round_up(m, tm_)

        x_pad = jnp.pad(x2d, ((0, m_p - m), (0, k_p - in_features)))

        # LoRA-A projection outside the kernel: (M, K) x (K, r) -> (M, r).
        # Negligible FLOPs / bytes; keeps the N grid axis megacore-parallel and
        # removes the per-step lora_a DMA + branch from the inner loop.
        xa = jnp.dot(x2d, a_t, preferred_element_type=jnp.float32)
        xa_pad = jnp.pad(xa, ((0, m_p - m), (0, r_p - r)))

        grid = (m_p // tm_, n_p // tn_, k_p // tk_)

        cost = pl.CostEstimate(
            flops=2 * m_p * n_p * k_p + 2 * m_p * n_p * r_p,
            transcendentals=0,
            bytes_accessed=(in_bytes * (m_p * k_p + k_p * n_p)
                            + out_bytes * m_p * n_p
                            + 4 * (m_p * r_p + r_p * n_p + n_p)),
        )

        out_pad = pl.pallas_call(
            _lora_row_parallel_kernel,
            out_shape=jax.ShapeDtypeStruct((m_p, n_p), x.dtype),
            grid_spec=pltpu.PrefetchScalarGridSpec(
                num_scalar_prefetch=0,
                grid=grid,
                in_specs=[
                    pl.BlockSpec((tm_, tk_), lambda i, j, k: (i, k)),   # x
                    pl.BlockSpec((tk_, tn_), lambda i, j, k: (k, j)),   # W^T
                    pl.BlockSpec((tm_, r_p), lambda i, j, k: (i, 0)),   # xa (f32)
                    pl.BlockSpec((r_p, tn_), lambda i, j, k: (0, j)),   # scaled lora_b^T (f32)
                    pl.BlockSpec((1, tn_), lambda i, j, k: (0, j)),     # 2*bias (f32)
                ],
                out_specs=pl.BlockSpec((tm_, tn_), lambda i, j, k: (i, j)),
                scratch_shapes=[
                    pltpu.VMEM((tm_, tn_), jnp.float32),   # base-GEMM accumulator
                ],
            ),
            compiler_params=pltpu.CompilerParams(
                # xa is a plain input now, so both M and N are "parallel"
                # (v7x 2-TC split works even for single-M-tile decode shapes);
                # K is the reduction axis.
                dimension_semantics=("parallel", "parallel", "arbitrary"),
                vmem_limit_bytes=_vmem_limit_bytes(tm_, tn_, tk_, r_p,
                                                   in_bytes, out_bytes),
            ),
            cost_estimate=cost,
        )(x_pad, w_t, xa_pad, b_f32, bias2)

        out2d = out_pad[:m, :out_features]
        return out2d.reshape(*lead_shape, out_features)

    return forward


def _reference(x, weight, lora_a, lora_b, bias, scaling):
    xf = x.astype(jnp.float32)
    wf = weight.astype(jnp.float32)
    af = lora_a.astype(jnp.float32)
    bf = lora_b.astype(jnp.float32)
    biasf = bias.astype(jnp.float32)
    base = jnp.einsum("...i,oi->...o", xf, wf) + biasf
    lora = jnp.einsum("...r,or->...o", jnp.einsum("...i,ri->...r", xf, af), bf)
    out = base + lora * scaling
    return out + biasf   # second bias add, matching the PyTorch forward


if __name__ == "__main__":
    # Small, deterministic config that still exercises a real (2, 2, 2) grid.
    in_features = 256
    out_features = 256
    r = 8
    lora_alpha = 1.0
    scaling = lora_alpha / r

    batch, seq = 2, 64            # x: (batch, seq, in_features), M = 128

    key = jax.random.PRNGKey(0)
    kx, kw, ka, kb, kbias = jax.random.split(key, 5)

    x = jax.random.normal(kx, (batch, seq, in_features), dtype=jnp.float32)
    x = x.astype(jnp.bfloat16)
    weight = (jax.random.normal(kw, (out_features, in_features), dtype=jnp.float32)
              * 0.1).astype(jnp.bfloat16)
    # NOTE: the module initializes lora_b to zeros; use nonzero values so the
    # LoRA path is actually exercised (still deterministic).
    lora_a = (jax.random.normal(ka, (r, in_features), dtype=jnp.float32)
              * 0.1).astype(jnp.bfloat16)
    lora_b = (jax.random.normal(kb, (out_features, r), dtype=jnp.float32)
              * 0.1).astype(jnp.bfloat16)
    bias = (jax.random.normal(kbias, (out_features,), dtype=jnp.float32)
            * 0.1).astype(jnp.bfloat16)

    ref = _reference(x, weight, lora_a, lora_b, bias, scaling)

    # 1) Small explicit tiles -> multi-step (2, 2, 2) grid: exercises the f32
    #    accumulator carry across K and multiple M/N tiles.
    fwd_small = make_lora_row_parallel_linear(weight, lora_a, lora_b, bias,
                                              scaling=scaling,
                                              tm=64, tn=128, tk=128)
    out = jax.block_until_ready(fwd_small(x))
    assert out.shape == (batch, seq, out_features)
    assert out.dtype == x.dtype
    err = jnp.max(jnp.abs(out.astype(jnp.float32) - ref))
    assert jnp.allclose(out.astype(jnp.float32), ref, atol=2e-2, rtol=2e-2), (
        f"small-tile mismatch vs reference, max abs err = {err}")

    # 2) Generation-default tiles (capped to the problem) -> single-tile grid:
    #    exercises the auto tile/vmem-limit selection path.
    fwd_auto = make_lora_row_parallel_linear(weight, lora_a, lora_b, bias,
                                             scaling=scaling)
    out2 = jax.block_until_ready(fwd_auto(x))
    err2 = jnp.max(jnp.abs(out2.astype(jnp.float32) - ref))
    assert jnp.allclose(out2.astype(jnp.float32), ref, atol=2e-2, rtol=2e-2), (
        f"auto-tile mismatch vs reference, max abs err = {err2}")

    print("KERNEL_OK")
</pallas_src>

<mosaic_0001>
module attributes {stable_mosaic.version = 11 : i64} {
  func.func @_lora_row_parallel_kernel(%arg0: i32, %arg1: i32, %arg2: i32, %arg3: memref<64x128xbf16, #tpu.memory_space<vmem>>, %arg4: memref<128x128xbf16, #tpu.memory_space<vmem>>, %arg5: memref<64x8xf32, #tpu.memory_space<vmem>>, %arg6: memref<8x128xf32, #tpu.memory_space<vmem>>, %arg7: memref<1x128xf32, #tpu.memory_space<vmem>>, %arg8: memref<64x128xbf16, #tpu.memory_space<vmem>>, %arg9: memref<64x128xf32, #tpu.memory_space<vmem>>) attributes {dimension_semantics = [#tpu.dimension_semantics<parallel>, #tpu.dimension_semantics<parallel>, #tpu.dimension_semantics<arbitrary>], iteration_bounds = array<i64: 2, 2, 2>, scalar_prefetch = 0 : i64, scratch_operands = 1 : i64, tpu.core_type = #tpu.core_type<tc>, window_params = [{transform_indices = @transform_0, window_bounds = array<i64: 64, 128>}, {transform_indices = @transform_1, window_bounds = array<i64: 128, 128>}, {transform_indices = @transform_2, window_bounds = array<i64: 64, 8>}, {transform_indices = @transform_3, window_bounds = array<i64: 8, 128>}, {transform_indices = @transform_4, window_bounds = array<i64: 1, 128>}, {transform_indices = @transform_5, window_bounds = array<i64: 64, 128>}]} {
    %c0_i32 = arith.constant 0 : i32
    %0 = arith.cmpi eq, %arg2, %c0_i32 : i32
    %1 = arith.extui %0 : i1 to i32
    %c0_i32_0 = arith.constant 0 : i32
    %2 = arith.cmpi ne, %1, %c0_i32_0 : i32
    scf.if %2 {
      %cst_9 = arith.constant 0.000000e+00 : f32
      %12 = vector.broadcast %cst_9 : f32 to vector<64x128xf32>
      %c0_10 = arith.constant 0 : index
      %c0_11 = arith.constant 0 : index
      %13 = vector.load %arg9[%c0_10, %c0_11] : memref<64x128xf32, #tpu.memory_space<vmem>>, vector<64x128xf32>
      tpu.vector_store %arg9[%c0_10, %c0_11], %12 {strides = array<i32>} : memref<64x128xf32, #tpu.memory_space<vmem>>, vector<64x128xf32>,
    } else {
    }
    %c0 = arith.constant 0 : index
    %c0_1 = arith.constant 0 : index
    %3 = vector.load %arg9[%c0, %c0_1] : memref<64x128xf32, #tpu.memory_space<vmem>>, vector<64x128xf32>
    %c0_2 = arith.constant 0 : index
    %c0_3 = arith.constant 0 : index
    %4 = vector.load %arg3[%c0_2, %c0_3] : memref<64x128xbf16, #tpu.memory_space<vmem>>, vector<64x128xbf16>
    %c0_4 = arith.constant 0 : index
    %c0_5 = arith.constant 0 : index
    %5 = vector.load %arg4[%c0_4, %c0_5] : memref<128x128xbf16, #tpu.memory_space<vmem>>, vector<128x128xbf16>
    %cst = arith.constant dense<0.000000e+00> : vector<64x128xf32>
    %6 = tpu.matmul %4, %5, %cst {dimension_numbers = #tpu.dot_dimension_numbers<[1], [0], [0], [1], [0, 0, 1, 1], [], []>} : vector<64x128xbf16>, vector<128x128xbf16>, vector<64x128xf32> -> vector<64x128xf32>
    %7 = arith.addf %3, %6 : vector<64x128xf32>
    %c0_6 = arith.constant 0 : index
    %c0_7 = arith.constant 0 : index
    %8 = vector.load %arg9[%c0_6, %c0_7] : memref<64x128xf32, #tpu.memory_space<vmem>>, vector<64x128xf32>
    tpu.vector_store %arg9[%c0_6, %c0_7], %7 {strides = array<i32>} : memref<64x128xf32, #tpu.memory_space<vmem>>, vector<64x128xf32>,
    %c1_i32 = arith.constant 1 : i32
    %9 = arith.cmpi eq, %arg2, %c1_i32 : i32
    %10 = arith.extui %9 : i1 to i32
    %c0_i32_8 = arith.constant 0 : i32
    %11 = arith.cmpi ne, %10, %c0_i32_8 : i32
    scf.if %11 {
      %c0_9 = arith.constant 0 : index
      %c0_10 = arith.constant 0 : index
      %12 = vector.load %arg5[%c0_9, %c0_10] : memref<64x8xf32, #tpu.memory_space<vmem>>, vector<64x8xf32>
      %c0_11 = arith.constant 0 : index
      %c0_12 = arith.constant 0 : index
      %13 = vector.load %arg6[%c0_11, %c0_12] : memref<8x128xf32, #tpu.memory_space<vmem>>, vector<8x128xf32>
      %cst_13 = arith.constant dense<0.000000e+00> : vector<64x128xf32>
      %14 = tpu.matmul %12, %13, %cst_13 {dimension_numbers = #tpu.dot_dimension_numbers<[1], [0], [0], [1], [0, 0, 1, 1], [], []>} : vector<64x8xf32>, vector<8x128xf32>, vector<64x128xf32> -> vector<64x128xf32>
      %c0_14 = arith.constant 0 : index
      %c0_15 = arith.constant 0 : index
      %15 = vector.load %arg9[%c0_14, %c0_15] : memref<64x128xf32, #tpu.memory_space<vmem>>, vector<64x128xf32>
      %16 = arith.addf %15, %14 : vector<64x128xf32>
      %c0_16 = arith.constant 0 : index
      %c0_17 = arith.constant 0 : index
      %17 = vector.load %arg7[%c0_16, %c0_17] : memref<1x128xf32, #tpu.memory_space<vmem>>, vector<1x128xf32>
      %18 = vector.broadcast %17 : vector<1x128xf32> to vector<64x128xf32>
      %19 = arith.addf %16, %18 : vector<64x128xf32>
      %20 = arith.truncf %19 : vector<64x128xf32> to vector<64x128xbf16>
      %c0_18 = arith.constant 0 : index
      %c0_19 = arith.constant 0 : index
      %21 = vector.load %arg8[%c0_18, %c0_19] : memref<64x128xbf16, #tpu.memory_space<vmem>>, vector<64x128xbf16>
      tpu.vector_store %arg8[%c0_18, %c0_19], %20 {strides = array<i32>} : memref<64x128xbf16, #tpu.memory_space<vmem>>, vector<64x128xbf16>,
    } else {
    }
    return
  }
  func.func @transform_0(%arg0: i32, %arg1: i32, %arg2: i32) -> (i32, i32) {
    %c0_i32 = arith.constant 0 : i32
    return %arg0, %arg2 : i32, i32
  }
  func.func @transform_1(%arg0: i32, %arg1: i32, %arg2: i32) -> (i32, i32) {
    %c0_i32 = arith.constant 0 : i32
    return %arg2, %arg1 : i32, i32
  }
  func.func @transform_2(%arg0: i32, %arg1: i32, %arg2: i32) -> (i32, i32) {
    %c0_i32 = arith.constant 0 : i32
    %c0_i32_0 = arith.constant 0 : i32
    return %arg0, %c0_i32 : i32, i32
  }
  func.func @transform_3(%arg0: i32, %arg1: i32, %arg2: i32) -> (i32, i32) {
    %c0_i32 = arith.constant 0 : i32
    %c0_i32_0 = arith.constant 0 : i32
    return %c0_i32, %arg1 : i32, i32
  }
  func.func @transform_4(%arg0: i32, %arg1: i32, %arg2: i32) -> (i32, i32) {
    %c0_i32 = arith.constant 0 : i32
    %c0_i32_0 = arith.constant 0 : i32
    return %c0_i32, %arg1 : i32, i32
  }
  func.func @transform_5(%arg0: i32, %arg1: i32, %arg2: i32) -> (i32, i32) {
    %c0_i32 = arith.constant 0 : i32
    return %arg0, %arg1 : i32, i32
  }
}

</mosaic_0001>

<bundles_post_ra>
// kernel: tpu_custom_call.1
= control target key start
LH: loop header
LB: loop body
LE: loop exit
PB: predicated region body
PF: predicated region fallthrough
CT: control target
= control target key end

     0   :  { %s1868_s0 = inlined_call_operand.vmem [shape: bf16[128,256], index: 0, kind: input, shape index: {}]   ;;  %s1869_s1 = inlined_call_operand.hbm [shape: bf16[256,256], index: 1, kind: input, shape index: {}]   ;;  %s1870_s2 = inlined_call_operand.vmem [shape: f32[128,8], index: 2, kind: input, shape index: {}]   ;;  %s1871_s3 = inlined_call_operand.hbm [shape: f32[8,256], index: 3, kind: input, shape index: {}]   ;;  %s1872_s4 = inlined_call_operand.vmem [shape: f32[1,256], index: 4, kind: input, shape index: {}]   ;;  %s1873_s5 = inlined_call_operand.hbm [shape: bf16[128,256], index: 5, kind: output, shape index: {}]  }
   0x1   :  { %1888 = sst [smem:[#allocation31_spill]] %s1868_s0 }
   0x2   :  { %1889 = sst [smem:[#allocation32_spill]] %s1870_s2 }
   0x3   :  { %1890 = sst [smem:[#allocation33_spill]] %s1872_s4 }
   0x4   :  { %1891 = sst [smem:[#allocation34_spill]] %s1873_s5 }
   0x5   :  { %10 = vsyncpa [#allocation5], 0 }
   0x6   :  { %12 = vsyncpa [#allocation5 + $0x1], 0 }
   0x7   :  { %13 = vsyncpa [#allocation8], 0 }
   0x8   :  { %15 = vsyncpa [#allocation8 + $0x1], 0 }
   0x9   :  { %16 = vsyncpa [#allocation6], 0 }
   0xa   :  { %18 = vsyncpa [#allocation6 + $0x1], 0  ;;  %s1494_s18 = smov 0   ;;  %s1496_s19 = smov 0  }
   0xb   :  { %s1498_s20 = smov 0   ;;  %s1500_s21 = smov 0  }
   0xc   :  { %s1502_s22 = smov 0   ;;  %s1504_s23 = smov 0  }
   0xd   :  { %s1506_s24 = smov 0   ;;  %s1508_s25 = smov 0  }
   0xe   :  { %s1510_s26 = smov 0   ;;  %s1512_s27 = smov 0  }
   0xf   :  { %s1514_s28 = smov 0   ;;  %s1516_s29 = smov 0  }
  0x10   :  { %s1518_s30 = smov 0   ;;  %s1520_s6 = smov 0  }
  0x11   :  { %s1522_s7 = smov 0   ;;  %s1524_s8 = smov 0  }
  0x12   :  { %s1526_s9 = smov 0   ;;  %s1528_s10 = smov 0  }
  0x13 LB: > { %1892 = sst [smem:[#allocation13_spill]] %s1387_s18  ;;  %s36_s13 = sadd.s32 1, %s1443_s7  ;;  %s1455_s10 = sphi %s1528_s10, %s24_s10   ;;  %s1451_s9 = sphi %s1526_s9, %s1948_s9   ;;  %s1447_s8 = sphi %s1524_s8, %s1958_s8   ;;  %s1443_s7 = sphi %s1522_s7, %s1945_s7   ;;  %s1439_s6 = sphi %s1520_s6, %s1944_s6   ;;  %s1435_s30 = sphi %s1518_s30, %s1957_s30   ;;  %s1431_s29 = sphi %s1516_s29, %s1956_s29   ;;  %s1427_s28 = sphi %s1514_s28, %s1942_s28   ;;  %s1423_s27 = sphi %s1512_s27, %s1941_s27   ;;  %s1419_s26 = sphi %s1510_s26, %s1940_s26   ;;  %s1415_s25 = sphi %s1508_s25, %s1955_s25   ;;  %s1411_s24 = sphi %s1506_s24, %s1954_s24   ;;  %s1407_s23 = sphi %s1504_s23, %s1953_s23   ;;  %s1403_s22 = sphi %s1502_s22, %s1952_s22   ;;  %s1399_s21 = sphi %s1500_s21, %s1951_s21   ;;  %s1395_s20 = sphi %s1498_s20, %s1937_s20   ;;  %s1391_s19 = sphi %s1496_s19, %s1949_s19   ;;  %s1387_s18 = sphi %s1494_s18, %s1947_s18  }
  0x14   : > { %1893 = sst [smem:[#allocation14_spill]] %s1395_s20  ;;  %s39_s14 = sadd.s32 1, %s1447_s8 }
  0x15   : > { %1894 = sst [smem:[#allocation15_spill]] %s1419_s26  ;;  %p37_p0 = scmp.ge.s32.totalorder %s36_s13, 2 }
  0x16   : > { %1895 = sst [smem:[#allocation16_spill]] %s1427_s28  ;;  %s43_s15 = sadd.s32 1, %s1451_s9 }
  0x17   : > { %1896 = sst [smem:[#allocation17_spill]] %s1431_s29  ;;  %s52_s16 = sadd.s32 1, %s1427_s28 }
  0x18   : > { %1897 = sst [smem:[#allocation18_spill]] %s1435_s30  ;;  %p59_p1 = scmp.ne.s32.totalorder %s1427_s28, %s1423_s27 }
  0x19   : > { %1898 = sst [smem:[#allocation19_spill]] %s1439_s6  ;;  %s1960_s13 = smov (%p37_p0, %s36_s13), 0 }
  0x1a   : > { %1899 = sst [smem:[#allocation20_spill]] %s1443_s7  ;;  %s1962_s14 = smov (!%p37_p0, %s39_s14), %s1447_s8 }
  0x1b   : > { %1900 = sst [smem:[#allocation21_spill]] %s1451_s9  ;;  %s48_s17 = ssub.s32 %s1443_s7, %s1960_s13 }
  0x1c   : > { %1901 = sst [smem:[#allocation22_spill]] %s1960_s13  ;;  %p60_p2 = scmp.eq.s32.totalorder %s1455_s10, 0 }
  0x1d   : > { %p41_p3 = scmp.ge.s32.totalorder %s1962_s14, 2  ;;  %s80_s12 = sadd.s32 1, %s1419_s26 }
  0x1e   : > { %p1601_p4 = por %p60_p2, %p59_p1  ;;  %p87_p5 = scmp.ne.s32.totalorder %s1419_s26, %s1415_s25 }
  0x1f   : > { %s1964_s14 = smov (%p41_p3, %s1962_s14), 0  ;;  %s1966_s15 = smov (!%p41_p3, %s43_s15), %s1451_s9 }
  0x20   : > { %1903 = sst [smem:[#allocation23_spill]] %s1964_s14  ;;  %s76_s5 = ssub.s32 %s1447_s8, %s1964_s14 }
  0x21   : > { %p1614_p6 = por %p87_p5, %p60_p2  ;;  %p45_p7 = scmp.ge.s32.totalorder %s1966_s15, 2 }
  0x22   : > { %s77_s29 = sor.u32 %s76_s5, %s48_s17  ;;  %p93_p9 = scmp.ne.s32.totalorder %s1415_s25, %s1411_s24 }
  0x23   : > { %p78_p8 = scmp.eq.s32.totalorder %s77_s29, 0  ;;  %s1968_s15 = smov (%p45_p7, %s1966_s15), 0 }
  0x24   : > { %1905 = sst [smem:[#allocation24_spill]] %s1968_s15  ;;  %s47_s14 = ssub.s32 %s1451_s9, %s1968_s15 }
  0x25   : > { %s1623_s4 = scalar_select %p78_p8, %s1419_s26, %s80_s12  }
  0x26   : > { %s1907_s2 = sadd.s32 4294967295, %s1455_s10   ;;  %s49_s6 = sor.u32 %s48_s17, %s47_s14 }
  0x27   : > { %1906 = sst [smem:[#allocation25_spill]] %s1623_s4  ;;  %p1629_p10 = scmp.eq.s32.totalorder %s1907_s2, 0 }
  0x28   : > { %p130_p11 = scmp.eq.s32.totalorder %s76_s5, 0  ;;  %p50_p12 = scmp.eq.s32.totalorder %s49_s6, 0 }
  0x29   : > { %p1635_p13 = por %p1629_p10, %p93_p9  ;;  %s132_s29 = sadd.s32 1, %s1407_s23 }
  0x2a   : > { %p139_p0 = scmp.ne.s32.totalorder %s1407_s23, %s1403_s22  ;;  %p145_p3 = scmp.ne.s32.totalorder %s1403_s22, %s1399_s21 }
  0x2b   : > { %s1909_s24 = scalar_select %p1635_p13, 1, 0 }
  0x2c   : > { %s1643_s2 = scalar_select %p50_p12, %s1427_s28, %s52_s16  }
  0x2d   : > { %1910 = sst [smem:[#allocation26_spill]] %s1909_s24  ;;  %p1650_p1 = por %p139_p0, %p60_p2 }
  0x2e   : > { %1911 = sst [smem:[#allocation27_spill]] %s1643_s2  ;;  %s183_s6 = sor.u32 %s76_s5, %s47_s14 }
  0x2f   : > { %s1646_s12 = scalar_select %p130_p11, %s1407_s23, %s132_s29  }
  0x30   : > { %s186_s15 = sadd.s32 1, %s1395_s20  ;;  %p1659_p5 = por %p145_p3, %p1629_p10 }
  0x31   : > { %1912 = sst [smem:[#allocation28_spill]] %s1646_s12  ;;  %p184_p7 = scmp.eq.s32.totalorder %s183_s6, 0 }
  0x32   : > { %p196_p8 = scmp.ne.s32.totalorder %s1395_s20, %s1391_s19  ;;  %s1915_s24 = sadd.s32 4294967295, %s1455_s10  }
  0x33   : > { %p197_p9 = scmp.eq.s32.totalorder %s1915_s24, 7  ;;  %p202_p2 = scmp.ne.s32.totalorder %s1391_s19, %s1387_s18 }
  0x34   : > { %s1668_s16 = scalar_select %p184_p7, %s1395_s20, %s186_s15  }
  0x35   : > { %p1670_p11 = por %p197_p9, %p196_p8  ;;  %s1918_s2 = sadd.s32 4294967294, %s1455_s10  }
  0x36   : > { %1916 = sst [smem:[#allocation29_spill]] %s1668_s16  ;;  %p203_p12 = scmp.eq.s32.totalorder %s1918_s2, 7 }
  0x37   : > { %p907_p10 = scmp.ge.s32.totalorder %s1455_s10, 8 }
  0x38   : > { %p1678_p0 = por %p203_p12, %p202_p2 }
  0x39   : > { %219 = sbr.rel (%p907_p10) target bundleno = 93 (0x5d), region = 16 }
  0x3a   : > { %s1919_s5 = scalar_select %p1678_p0, 1, 0 }
  0x3c   : > { %1920 = sst [smem:[#allocation30_spill]] %s1919_s5 }
  0x3e   : > { %222 = sbr.rel (!%p1601_p4) target bundleno = 80 (0x50), region = 20  ;;  %s224_s21 = sand.u32 (%p1601_p4), 1, %s1427_s28  }
  0x3f   : > { %s989_s30 = sshll.u32 (%p1601_p4), %s1451_s9, 4  ;;  %s908_s14 = sshll.u32 (%p1601_p4), %s224_s21, 5 }
  0x40   : > { %s229_s15 = sadd.s32 (%p1601_p4), %s1443_s7, %s989_s30  ;;  %s1921_s0 = sld [smem:[#allocation31_spill]] (%p1601_p4) }
  0x41   : > { %s911_s24 = sshll.u32 (%p1601_p4), %s229_s15, 2  ;;  %s226_s16 = scalar_lea.vmem (%p1601_p4), [#allocation3], %s908_s14 }
  0x46   : > { %s231_s12 = scalar_lea.vmem %s1921_s0, %s911_s24 }
  0x47   : > { %v248_v0 = vld [vmem:[%s231_s12] sm:$0xf]  ;;  %v250_v1 = vld [vmem:[%s231_s12 + $0x8] sm:$0xf]  ;;  %v252_v2 = vld [vmem:[%s231_s12 + $0x10] sm:$0xf] }
  0x48   : > { %249 = vst [vmem:[%s226_s16] sm:$0xf] %v248_v0  ;;  %v254_v3 = vld [vmem:[%s231_s12 + $0x18] sm:$0xf]  ;;  %v256_v4 = vld [vmem:[%s231_s12 + $0x20] sm:$0xf] }
  0x49   : > { %251 = vst [vmem:[%s226_s16 + $0x4] sm:$0xf] %v250_v1  ;;  %v258_v5 = vld [vmem:[%s231_s12 + $0x28] sm:$0xf]  ;;  %v260_v6 = vld [vmem:[%s231_s12 + $0x30] sm:$0xf] }
  0x4a   : > { %253 = vst [vmem:[%s226_s16 + $0x8] sm:$0xf] %v252_v2  ;;  %v262_v7 = vld [vmem:[%s231_s12 + $0x38] sm:$0xf] }
  0x4b   : > { %255 = vst [vmem:[%s226_s16 + $0xc] sm:$0xf] %v254_v3 }
  0x4c   : > { %257 = vst [vmem:[%s226_s16 + $0x10] sm:$0xf] %v256_v4 }
  0x4d   : > { %259 = vst [vmem:[%s226_s16 + $0x14] sm:$0xf] %v258_v5 }
  0x4e   : > { %261 = vst [vmem:[%s226_s16 + $0x18] sm:$0xf] %v260_v6 }
  0x4f   : > { %263 = vst [vmem:[%s226_s16 + $0x1c] sm:$0xf] %v262_v7 }
  0x50 PF: > { %s304_s11 = sand.u32 1, %s1419_s26   ;;  %s990_s21 = sshll.u32 %s1443_s7, 5 }
  0x51   : > { %s912_s30 = sshll.u32 %s304_s11, 6  ;;  %s313_s14 = sadd.s32 %s1447_s8, %s990_s21 }
  0x52   : > { %s915_s15 = sshll.u32 %s313_s14, 2  ;;  %s308_s24 = scalar_lea.vmem [#allocation4], %s912_s30 }
  0x53   : > { %s318_s6 = sshll.u32 %s308_s24, 4  ;;  %s315_s12 = scalar_lea.hbm %s1869_s1, %s915_s15  ;;  %s319_s6 = int_to_ptr.vmem [resolvable:$true] %s318_s6 }
  0x54   : > { %s316_s16 = sshll.u32 %s315_s12, 4  ;;  %s337_s9 = sand.u32 1, %s1407_s23   ;;  %s317_s16 = int_to_ptr.hbm [resolvable:$true] %s316_s16 }
  0x55   : > { %s305_s28 = scalar_lea.sflag [#allocation5], %s304_s11  ;;  %s1457_s20 = smov 128  }
  0x56   : > { %s1458_s26 = smov 64   ;;  %s1459_s5 = smov 4  }
  0x57   : > { %1054 = dma.hbm_to_vmem [thread:$0]  (%p1614_p6), %s317_s16, 1024, %s319_s6, %s305_s28, %s1457_s20, %s1458_s26, %s1459_s5  }
  0x58   : > { %s916_s7 = sshll.u32 %s337_s9, 3  ;;  %s917_s21 = sshll.u32 %s1447_s8, 3 }
  0x59   : > { %s345_s24 = scalar_lea.hbm %s1871_s3, %s917_s21  ;;  %s341_s18 = scalar_lea.vmem [#allocation7], %s916_s7 }
  0x5a   : > { %s349_s0 = sshll.u32 %s341_s18, 4  ;;  %s347_s15 = sshll.u32 %s345_s24, 4  ;;  %s350_s0 = int_to_ptr.vmem [resolvable:$true] %s349_s0  ;;  %s348_s15 = int_to_ptr.hbm [resolvable:$true] %s347_s15 }
  0x5b   : > { %s338_s2 = scalar_lea.sflag [#allocation8], %s337_s9 }
  0x5c   : > { %1055 = dma.hbm_to_vmem [thread:$0]  (%p1650_p1), %s348_s15, 128, %s350_s0, %s338_s2  }
  0x5d PF: > { %p918_p4 = scmp.ge.s32.totalorder %s1455_s10, 1  ;;  %p360_p3 = scmp.lt.s32.totalorder %s1455_s10, 9 }
  0x5f   : > { %p361_p6 = pnand %p918_p4, %p360_p3 }
  0x60   : > { %s367_s26 = sand.u32 (!%p361_p6), 1, %s1423_s27   ;;  %s373_s28 = sand.u32 (!%p361_p6), 1, %s1415_s25  }
  0x61   : > { %364 = sbr.rel (%p361_p6) target bundleno = 488 (0x1e8), region = 77  ;;  %s919_s7 = sshll.u32 (!%p361_p6), %s367_s26, 5 }
  0x62   : > { %s920_s18 = sshll.u32 (!%p361_p6), %s373_s28, 6  ;;  %s1710_s13 = scalar_lea.vmem (!%p361_p6), [#allocation3], %s919_s7 }
  0x63   : > { %s374_s5 = scalar_lea.sflag (!%p361_p6), [#allocation5], %s373_s28  ;;  %s1712_s9 = scalar_lea.vmem (!%p361_p6), [#allocation4], %s920_s18 }
  0x66   : > { %1374 = dma.done.wait (%p1635_p13), %s374_s5, 1024  }
  0x67   : > { %1376 = vsyncadd (%p1635_p13), %s374_s5, 4294966272  ;;  %s383_s17 = sand.u32 1, %s1403_s22  }
  0x68   : > { %s1719_s11 = sshll.u32 %s383_s17, 3  ;;  %s384_s27 = scalar_lea.sflag [#allocation8], %s383_s17 }
  0x69   : > { %s387_s6 = scalar_lea.vmem [#allocation7], %s1719_s11 }
  0x6a   : > { %1378 = dma.done.wait (%p1659_p5), %s384_s27, 128  }
  0x6b   : > { %1380 = vsyncadd (%p1659_p5), %s384_s27, 4294967168  ;;  %s1923_s12 = sld [smem:[#allocation19_spill]]  ;;  %s429_s21 = sand.u32 1, %s1391_s19  }
  0x6c   : > { %s1924_s16 = sld [smem:[#allocation18_spill]]  ;;  %s922_s30 = sshll.u32 %s429_s21, 5 }
  0x6d   : > { %s1925_s4 = sld [smem:[#allocation32_spill]]  ;;  %s1743_s18 = scalar_lea.vmem [#allocation9], %s922_s30 }
  0x6e   : > { %s1926_s28 = sld [smem:[#allocation33_spill]] }
  0x6f   : > { %s1927_s5 = sld [smem:[#allocation17_spill]] }
  0x71   : > { %s923_s14 = sshll.u32 %s1923_s12, 3 }
  0x72   : > { %p435_p13 = scmp.lt.s32.totalorder %s923_s14, 15  ;;  %p440_p1 = scmp.lt.s32.totalorder %s1924_s16, 1 }
  0x74   : > { %s1970_s14 = smov (!%p435_p13, %s923_s14), 15  ;;  %s1972_s16 = smov (!%p440_p1, %s1924_s16), 1 }
  0x75   : > { %s924_s24 = sshll.u32 %s1970_s14, 3  ;;  %s442_s7 = scalar_lea.vmem %s1926_s28, %s1972_s16 }
  0x76   : > { %s1737_s2 = scalar_lea.vmem %s1925_s4, %s924_s24  ;;  %p925_p5 = scmp.ne.s32.totalorder %s1927_s5, 0 }
  0x78   : > { %447 = sbr.rel (%p925_p5) target bundleno = 134 (0x86), region = 93 }
  0x7d   : > { %v1460_v8 = vmov 0.0  }
  0x7e   : > { %448 = vst [vmem:[#allocation2 + $0x30] sm:$0xff] %v1460_v8 }
  0x7f   : > { %449 = vst [vmem:[#allocation2] sm:$0xff] %v1460_v8 }
  0x80   : > { %450 = vst [vmem:[#allocation2 + $0x18] sm:$0xff] %v1460_v8 }
  0x81   : > { %451 = vst [vmem:[#allocation2 + $0x10] sm:$0xff] %v1460_v8 }
  0x82   : > { %452 = vst [vmem:[#allocation2 + $0x8] sm:$0xff] %v1460_v8 }
  0x83   : > { %453 = vst [vmem:[#allocation2 + $0x20] sm:$0xff] %v1460_v8 }
  0x84   : > { %454 = vst [vmem:[#allocation2 + $0x28] sm:$0xff] %v1460_v8 }
  0x85   : > { %455 = vst [vmem:[#allocation2 + $0x38] sm:$0xff] %v1460_v8 }
  0x86 PF: > { %v1002_v9 = vld [vmem:[%s1712_s9 + $0x38] sm:$0xff]  ;;  %v1001_v10 = vld [vmem:[%s1712_s9 + $0x30] sm:$0xff]  ;;  %v1000_v11 = vld [vmem:[%s1712_s9 + $0x28] sm:$0xff] }
  0x87   : > { %560 = vmatpush.bf16.msra.mxu0 %v1002_v9  ;;  %1027 = vmatpush.bf16.msra.mxu1 %v1002_v9  ;;  %v999_v12 = vld [vmem:[%s1712_s9 + $0x20] sm:$0xff]  ;;  %v998_v13 = vld [vmem:[%s1712_s9 + $0x18] sm:$0xff]  ;;  %v997_v14 = vld [vmem:[%s1712_s9 + $0x10] sm:$0xff] }
  0x88   : > { %1028 = vmatpush.bf16.msra.mxu2 %v1002_v9  ;;  %1029 = vmatpush.bf16.msra.mxu3 %v1002_v9  ;;  %v996_v15 = vld [vmem:[%s1712_s9 + $0x8] sm:$0xff]  ;;  %v995_v16 = vld [vmem:[%s1712_s9] sm:$0xff]  ;;  %v993_v19 = vld [vmem:[%s1710_s13 + $0x10] sm:$0xff] }
  0x89   : > { %v991_v17 = vld [vmem:[%s1710_s13] sm:$0xff]  ;;  %v992_v18 = vld [vmem:[%s1710_s13 + $0x8] sm:$0xff]  ;;  %v994_v20 = vld [vmem:[%s1710_s13 + $0x18] sm:$0xff]  ;;  %s1928_s13 = sld [smem:[#allocation17_spill]] }
  0x8a   : > { %v456_v21 = vld [vmem:[#allocation2 + $0x30] sm:$0xff]  ;;  %v458_v22 = vld [vmem:[#allocation2 + $0x18] sm:$0xff]  ;;  %v460_v27 = vld [vmem:[#allocation2 + $0x8] sm:$0xff] }
  0x8b   : > { %561 = vmatpush.bf16.msra.mxu0 %v1001_v10  ;;  %1030 = vmatpush.bf16.msra.mxu1 %v1001_v10  ;;  %v462_v28 = vld [vmem:[#allocation2 + $0x28] sm:$0xff]  ;;  %v457_v29 = vld [vmem:[#allocation2] sm:$0xff]  ;;  %v459_v30 = vld [vmem:[#allocation2 + $0x10] sm:$0xff] }
  0x8c   : > { %1031 = vmatpush.bf16.msra.mxu2 %v1001_v10  ;;  %1032 = vmatpush.bf16.msra.mxu3 %v1001_v10  ;;  %v461_v39 = vld [vmem:[#allocation2 + $0x20] sm:$0xff]  ;;  %v463_v40 = vld [vmem:[#allocation2 + $0x38] sm:$0xff] }
  0x8f   : > { %562 = vmatpush.bf16.msra.mxu0 %v1000_v11  ;;  %1033 = vmatpush.bf16.msra.mxu1 %v1000_v11  ;;  %p974_p7 = scmp.ne.s32.totalorder %s1928_s13, 1 }
  0x90   : > { %1034 = vmatpush.bf16.msra.mxu2 %v1000_v11  ;;  %1035 = vmatpush.bf16.msra.mxu3 %v1000_v11 }
  0x93   : > { %563 = vmatpush.bf16.msra.mxu0 %v999_v12  ;;  %1036 = vmatpush.bf16.msra.mxu1 %v999_v12 }
  0x94   : > { %1037 = vmatpush.bf16.msra.mxu2 %v999_v12  ;;  %1038 = vmatpush.bf16.msra.mxu3 %v999_v12 }
  0x97   : > { %564 = vmatpush.bf16.msra.mxu0 %v998_v13  ;;  %1039 = vmatpush.bf16.msra.mxu1 %v998_v13 }
  0x98   : > { %1040 = vmatpush.bf16.msra.mxu2 %v998_v13  ;;  %1041 = vmatpush.bf16.msra.mxu3 %v998_v13 }
  0x9b   : > { %565 = vmatpush.bf16.msra.mxu0 %v997_v14  ;;  %1042 = vmatpush.bf16.msra.mxu1 %v997_v14 }
  0x9c   : > { %1043 = vmatpush.bf16.msra.mxu2 %v997_v14  ;;  %1044 = vmatpush.bf16.msra.mxu3 %v997_v14 }
  0x9f   : > { %566 = vmatpush.bf16.msra.mxu0 %v996_v15  ;;  %1045 = vmatpush.bf16.msra.mxu1 %v996_v15 }
  0xa0   : > { %1046 = vmatpush.bf16.msra.mxu2 %v996_v15  ;;  %1047 = vmatpush.bf16.msra.mxu3 %v996_v15 }
  0xa3   : > { %567 = vmatpush.bf16.msra.mxu0 %v995_v16  ;;  %1048 = vmatpush.bf16.msra.mxu1 %v995_v16 }
  0xa4   : > { %1049 = vmatpush.bf16.msra.mxu2 %v995_v16  ;;  %1050 = vmatpush.bf16.msra.mxu3 %v995_v16 }
  0xa6   : > { %568 = vmatmul.bf16.vlgmr.msra.gmra.mxu0 %v991_v17  ;;  %573 = vmatmul.bf16.vlgmr.msra.gmra.mxu1 %v992_v18 }
  0xa7   : > { %578 = vmatmul.bf16.vlgmr.msra.gmra.mxu2 %v993_v19  ;;  %583 = vmatmul.bf16.vlgmr.msra.gmra.mxu3 %v994_v20 }
 0x123   : > { %v569_v23 = vpop.f32.mrf.mxu0  ;;  %v574_v24 = vpop.f32.mrf.mxu1 }
 0x124   : > { %v589_v25 = vadd.f32 %v569_v23, %v456_v21  ;;  %v591_v26 = vadd.f32 %v574_v24, %v458_v22 }
 0x126   : > { %597 = vst [vmem:[#allocation2 + $0x30] sm:$0xff] %v589_v25 }
 0x127   : > { %599 = vst [vmem:[#allocation2 + $0x18] sm:$0xff] %v591_v26 }
 0x12a   : > { %v579_v31 = vpop.f32.mrf.mxu2  ;;  %v584_v32 = vpop.f32.mrf.mxu3 }
 0x12b   : > { %v593_v33 = vadd.f32 %v579_v31, %v460_v27  ;;  %v595_v34 = vadd.f32 %v584_v32, %v462_v28  ;;  %v571_v35 = vpop.f32.mrf.mxu0  ;;  %v576_v36 = vpop.f32.mrf.mxu1 }
 0x12c   : > { %v590_v37 = vadd.f32 %v571_v35, %v457_v29  ;;  %v592_v38 = vadd.f32 %v576_v36, %v459_v30 }
 0x12d   : > { %601 = vst [vmem:[#allocation2 + $0x8] sm:$0xff] %v593_v33 }
 0x12e   : > { %603 = vst [vmem:[#allocation2 + $0x28] sm:$0xff] %v595_v34 }
 0x12f   : > { %598 = vst [vmem:[#allocation2] sm:$0xff] %v590_v37 }
 0x130   : > { %600 = vst [vmem:[#allocation2 + $0x10] sm:$0xff] %v592_v38 }
 0x132   : > { %v581_v41 = vpop.f32.mrf.mxu2  ;;  %v586_v42 = vpop.f32.mrf.mxu3  ;;  %608 = sbr.rel (%p974_p7) target bundleno = 463 (0x1cf), region = 97 }
 0x133   : > { %v594_v43 = vadd.f32 %v581_v41, %v461_v39  ;;  %v596_v44 = vadd.f32 %v586_v42, %v463_v40 }
 0x135   : > { %602 = vst [vmem:[#allocation2 + $0x20] sm:$0xff] %v594_v43 }
 0x136   : > { %604 = vst [vmem:[#allocation2 + $0x38] sm:$0xff] %v596_v44 }
 0x137   : > { %v617_v45 = vld [vmem:[%s387_s6] sm:$0xff]  ;;  %vm618_vm0 = vcmask 64512   ;;  %v611_v47 = vld [vmem:[%s1737_s2 + $0x10] sm:$0xff]  ;;  %v612_v51 = vld [vmem:[%s1737_s2 + $0x18] sm:$0xff] }
 0x138   : > { %v609_v46 = vld [vmem:[%s1737_s2] sm:$0xff]  ;;  %658 = vmatpush.msra.mxu0 %v617_v45  ;;  %1051 = vmatpush.msra.mxu1 %v617_v45  ;;  %v615_v49 = vld [vmem:[%s1737_s2 + $0x30] sm:$0xff]  ;;  %v610_v50 = vld [vmem:[%s1737_s2 + $0x8] sm:$0xff] }
 0x139   : > { %v613_v48 = vld [vmem:[%s1737_s2 + $0x20] sm:$0xff]  ;;  %1052 = vmatpush.msra.mxu2 %v617_v45  ;;  %1053 = vmatpush.msra.mxu3 %v617_v45  ;;  %v614_v52 = vld [vmem:[%s1737_s2 + $0x28] sm:$0xff]  ;;  %v616_v53 = vld [vmem:[%s1737_s2 + $0x38] sm:$0xff] }
 0x13a   : > { %975 = vmatmul.msk.f32.vlgmr.msra.gmra.mxu0 %vm618_vm0, %v609_v46  ;;  %977 = vmatmul.msk.f32.vlgmr.msra.gmra.mxu1 %vm618_vm0, %v611_v47  ;;  %v684_v56 = vld [vmem:[#allocation2 + $0x30] sm:$0xff]  ;;  %v686_v57 = vld [vmem:[#allocation2 + $0x18] sm:$0xff]  ;;  %v685_v58 = vld [vmem:[#allocation2] sm:$0xff] }
 0x13b   : > { %979 = vmatmul.msk.f32.vlgmr.msra.gmra.mxu2 %vm618_vm0, %v613_v48  ;;  %981 = vmatmul.msk.f32.vlgmr.msra.gmra.mxu3 %vm618_vm0, %v615_v49  ;;  %v687_v59 = vld [vmem:[#allocation2 + $0x10] sm:$0xff]  ;;  %v1216_v61 = vld [vmem:[%s442_s7] ss:$0 sm:$0xff]  ;;  %v688_v7 = vld [vmem:[#allocation2 + $0x8] sm:$0xff] }
 0x13c   : > { %v690_v8 = vld [vmem:[#allocation2 + $0x28] sm:$0xff]  ;;  %v689_v13 = vld [vmem:[#allocation2 + $0x20] sm:$0xff] }
 0x13d   : > { %v691_v14 = vld [vmem:[#allocation2 + $0x38] sm:$0xff] }
 0x142   : > { %976 = vmatmul.msk.f32.gmra.mxu0 %vm618_vm0, %v610_v50  ;;  %978 = vmatmul.msk.f32.gmra.mxu1 %vm618_vm0, %v612_v51 }
 0x143   : > { %980 = vmatmul.msk.f32.gmra.mxu2 %vm618_vm0, %v614_v52  ;;  %982 = vmatmul.msk.f32.gmra.mxu3 %vm618_vm0, %v616_v53 }
 0x1b7   : > { %v660_v54 = vpop.f32.mrf.mxu0  ;;  %v666_v55 = vpop.f32.mrf.mxu1 }
 0x1b8   : > { %v692_v60 = vadd.f32 %v684_v56, %v660_v54  ;;  %v694_v62 = vadd.f32 %v686_v57, %v666_v55 }
 0x1ba   : > { %v704_v5 = vadd.f32 %v1216_v61, %v692_v60  ;;  %v706_v6 = vadd.f32 %v1216_v61, %v694_v62 }
 0x1be   : > { %v672_v63 = vpop.f32.mrf.mxu2  ;;  %v678_v0 = vpop.f32.mrf.mxu3 }
 0x1bf   : > { %v663_v1 = vpop.f32.mrf.mxu0  ;;  %v669_v2 = vpop.f32.mrf.mxu1  ;;  %v696_v15 = vadd.f32 %v688_v7, %v672_v63  ;;  %v698_v16 = vadd.f32 %v690_v8, %v678_v0 }
 0x1c0   : > { %v693_v3 = vadd.f32 %v685_v58, %v663_v1  ;;  %v695_v4 = vadd.f32 %v687_v59, %v669_v2 }
 0x1c1   : > { %v708_v21 = vadd.f32 %v1216_v61, %v696_v15  ;;  %v710_v22 = vadd.f32 %v1216_v61, %v698_v16 }
 0x1c2   : > { %v705_v9 = vadd.f32 %v1216_v61, %v693_v3  ;;  %v707_v10 = vadd.f32 %v1216_v61, %v695_v4 }
 0x1c4   : > { %v1007_v11 = vpack.c.bf16 %v705_v9, %v704_v5  ;;  %v1012_v12 = vpack.c.bf16 %v707_v10, %v706_v6 }
 0x1c6   : > { %1008 = vst [vmem:[%s1743_s18] sm:$0xff] %v1007_v11   ;;  %v675_v17 = vpop.f32.mrf.mxu2  ;;  %v681_v18 = vpop.f32.mrf.mxu3 }
 0x1c7   : > { %1024 = vst [vmem:[%s1743_s18 + $0x8] sm:$0xff] %v1012_v12   ;;  %v697_v19 = vadd.f32 %v689_v13, %v675_v17  ;;  %v699_v20 = vadd.f32 %v691_v14, %v681_v18 }
 0x1c9   : > { %v709_v23 = vadd.f32 %v1216_v61, %v697_v19  ;;  %v711_v24 = vadd.f32 %v1216_v61, %v699_v20 }
 0x1cb   : > { %v1017_v25 = vpack.c.bf16 %v709_v23, %v708_v21  ;;  %v1022_v26 = vpack.c.bf16 %v711_v24, %v710_v22 }
 0x1cd   : > { %1025 = vst [vmem:[%s1743_s18 + $0x10] sm:$0xff] %v1017_v25  }
 0x1ce   : > { %1026 = vst [vmem:[%s1743_s18 + $0x18] sm:$0xff] %v1022_v26  }
 0x1cf PF: > { %s1930_s27 = sld [smem:[#allocation19_spill]]  ;;  %s743_s14 = sshll.u32 %s1743_s18, 4  ;;  %s744_s14 = int_to_ptr.vmem [resolvable:$true] %s743_s14 }
 0x1d0   : > { %s1931_s6 = sld [smem:[#allocation18_spill]]  ;;  %s729_s20 = scalar_lea.sflag [#allocation6], %s429_s21 }
 0x1d1   : > { %s1932_s15 = sld [smem:[#allocation34_spill]] }
 0x1d5   : > { %s1003_s12 = sshll.u32 %s1930_s27, 4 }
 0x1d6   : > { %s740_s16 = sadd.s32 %s1931_s6, %s1003_s12 }
 0x1d7   : > { %s986_s30 = sshll.u32 %s740_s16, 2  ;;  %s1293_s18 = scalar_lea.hbm %s1932_s15, 128 }
 0x1d8   : > { %s742_s4 = scalar_lea.hbm %s1932_s15, %s986_s30 }
 0x1d9   : > { %s745_s2 = sshll.u32 %s742_s4, 4  ;;  %s746_s2 = int_to_ptr.hbm [resolvable:$true] %s745_s2 }
 0x1da   : > { %s1287_s26 = sshra.s32 %s746_s2, 4  ;;  %s1288_s26 = int_to_ptr.hbm [resolvable:$true] %s1287_s26 }
 0x1db   : > { %s1289_s28 = scalar_lea.hbm %s1288_s26, 32  ;;  %p1294_p12 = scmp.lt.s32.totalorder %s1288_s26, %s1932_s15 }
 0x1dc   : > { %p1290_p8 = scmp.ne.s32.totalorder %s1288_s26, %s1289_s28  ;;  %p1295_p10 = scmp.lt.s32.totalorder %s1293_s18, %s1289_s28 }
 0x1de   : > { %p1291_p9 = pnand %p1290_p8, %p1670_p11  ;;  %p1296_p4 = por %p1295_p10, %p1294_p12 }
 0x1e0   : > { %p1292_p2 = pneg %p1291_p9 }
 0x1e2   : > { %p1297_p3 = pnand %p1296_p4, %p1292_p2 }
 0x1e4   : > { %1300 = shalt.err (!%p1297_p3)
}
 0x1e5   : > { %s1461_s21 = smov 64   ;;  %s1462_s17 = smov 128  }
 0x1e6   : > { %s1463_s11 = smov 4  }
 0x1e7   : > { %1058 = dma.vmem_to_hbm [thread:$0]  (%p1670_p11), %s744_s14, 512, %s746_s2, %s729_s20, %s1461_s21, %s1462_s17, %s1463_s11  }
 0x1e8 PF: > { %s1933_s27 = sld [smem:[#allocation13_spill]]  ;;  %p1064_p6 = scmp.ge.s32.totalorder %s1455_s10, 2 }
 0x1ea   : > { %p1061_p13 = pnand %p1064_p6, %p1678_p0 }
 0x1ec   : > { %p1062_p1 = pneg %p1061_p13 }
 0x1ee   : > { %s760_s12 = sand.u32 1, %s1933_s27  }
 0x1ef   : > { %s761_s16 = scalar_lea.sflag [#allocation6], %s760_s12 }
 0x1f0   : > { %1382 = dma.done.wait (%p1062_p1), %s761_s16, 512  }
 0x1f1   : > { %1384 = vsyncadd (%p1062_p1), %s761_s16, 4294966784  ;;  %s24_s10 = sadd.s32 1, %s1455_s10   ;;  %s1936_s29 = sld [smem:[#allocation14_spill]] }
 0x1f2   : > { %p1809_p5 = scmp.ge.s32.totalorder %s24_s10, 10   ;;  %s1937_s20 = sld [smem:[#allocation29_spill]] }
 0x1f3   : > { %s1938_s14 = sld [smem:[#allocation28_spill]]  ;;  %s1947_s18 = smov %s1391_s19 }
 0x1f4   : > { %s1939_s0 = sld [smem:[#allocation15_spill]]  ;;  %s1951_s21 = smov %s1403_s22 }
 0x1f5   : > { %s1940_s26 = sld [smem:[#allocation25_spill]]  ;;  %s1952_s22 = smov %s1407_s23 }
 0x1f6   : > { %s1941_s27 = sld [smem:[#allocation16_spill]]  ;;  %s1954_s24 = smov %s1415_s25 }
 0x1f7   : > { %s1942_s28 = sld [smem:[#allocation27_spill]]  ;;  %s1949_s19 = smov %s1936_s29 }
 0x1f8   : > { %s1943_s4 = sld [smem:[#allocation20_spill]]  ;;  %s1957_s30 = smov %s1447_s8 }
 0x1f9   : > { %s1944_s6 = sld [smem:[#allocation21_spill]]  ;;  %s1953_s23 = smov %s1938_s14 }
 0x1fa   : > { %s1945_s7 = sld [smem:[#allocation22_spill]]  ;;  %s1955_s25 = smov %s1939_s0 }
 0x1fb   : > { %s1946_s2 = sld [smem:[#allocation23_spill]] }
 0x1fc   : > { %s1948_s9 = sld [smem:[#allocation24_spill]] }
 0x1fd   :  { %23 = sbr.rel (!%p1809_p5) target bundleno = 19 (0x13), region = 161 }
 0x1fe   : > { %s1956_s29 = smov %s1943_s4 }
 0x201   : > { %s1958_s8 = smov %s1946_s2 }
 0x202   :  { %767 = vsyncpa [#allocation5], 1 }
 0x203   :  { %769 = vsyncpa [#allocation5 + $0x1], 1 }
 0x204   :  { %770 = vsyncpa [#allocation8], 1 }
 0x205   :  { %772 = vsyncpa [#allocation8 + $0x1], 1 }
 0x206   :  { %773 = vsyncpa [#allocation6], 1 }
 0x207   :  { %775 = vsyncpa [#allocation6 + $0x1], 1 }

</bundles_post_ra>
